<compile_context>
chip_gen: v7x
topology: tpu7x:2x2x1
jax: 0.10.0
libtpu: 0.0.40
codegen_flags: <defaults>
</compile_context>

<pallas_src>
import numpy as np
import jax
import jax.numpy as jnp
from jax.experimental import pallas as pl
from jax.experimental.pallas import tpu as pltpu


# ----------------------------------------------------------------------------
# Pallas kernel: elementwise exp on one (tm, C) tile.
# ----------------------------------------------------------------------------
def _exp_kernel(x_ref, o_ref):
    # Compute in f32 on the EUP; store back in the native dtype.
    o_ref[...] = jnp.exp(x_ref[...].astype(jnp.float32)).astype(o_ref.dtype)


def _cdiv(a, b):
    return -(-a // b)


def _round_up(a, b):
    return _cdiv(a, b) * b


# ~2 MiB per block -> input+output, double-buffered = 4 buffers ~= 8 MiB VMEM.
_TARGET_BLOCK_BYTES = 2 * 1024 * 1024


# ----------------------------------------------------------------------------
# Wrapper: accepts any input shape, tiles it lane-densely, calls pallas_call.
# ----------------------------------------------------------------------------
def basic_exp(x):
    """y = exp(x), same shape as x.

    Float inputs keep their dtype (compute in f32 in-kernel); integer / bool
    inputs are promoted to float32, matching jnp.exp / torch.exp semantics.
    """
    orig_shape = x.shape

    if not jnp.issubdtype(x.dtype, jnp.floating):
        x = x.astype(jnp.float32)
    dtype = x.dtype
    itemsize = jnp.dtype(dtype).itemsize
    sub = {4: 8, 2: 16, 1: 32}.get(itemsize, 8)   # sublane packing multiple

    n = int(x.size)
    if n == 0:
        return jnp.reshape(x, orig_shape)

    xf = jnp.ravel(x)                              # layout-only, no HBM copy

    # Lane width: largest of {1024,512,256,128} dividing n -> no padding pass.
    C = None
    for c in (1024, 512, 256, 128):
        if n % c == 0:
            C = c
            break
    padded = C is None
    if padded:                                     # ragged tail: pad < 128 elems
        C = 128
        pad = _round_up(n, C) - n
        xf = jnp.concatenate([xf, jnp.zeros((pad,), dtype)])
    rows = int(xf.shape[0]) // C
    x2 = xf.reshape(rows, C)                       # layout-only

    # Block rows: ~2 MiB per block, multiple of the sublane packing; force
    # >= 2 grid steps when rows allow so the "parallel" axis can shard across
    # both TensorCores on v7x.
    tm_cap = max(sub, (_TARGET_BLOCK_BYTES // (C * itemsize)) // sub * sub)
    if rows <= sub:
        tm = rows                                  # single full-extent block
    else:
        tm = min(tm_cap, _round_up(_cdiv(rows, 2), sub))
    grid = (_cdiv(rows, tm),)                      # Pallas masks the last block

    y2 = pl.pallas_call(
        _exp_kernel,
        out_shape=jax.ShapeDtypeStruct((rows, C), dtype),
        grid_spec=pltpu.PrefetchScalarGridSpec(
            num_scalar_prefetch=0,
            grid=grid,
            in_specs=[pl.BlockSpec((tm, C), lambda i: (i, 0))],
            out_specs=pl.BlockSpec((tm, C), lambda i: (i, 0)),
        ),
        compiler_params=pltpu.CompilerParams(
            dimension_semantics=("parallel",),
        ),
    )(x2)

    if padded:
        return y2.reshape(-1)[:n].reshape(orig_shape)
    return y2.reshape(orig_shape)                  # layout-only


# ----------------------------------------------------------------------------
if __name__ == "__main__":
    key = jax.random.PRNGKey(0)
    k0, k1 = jax.random.split(key)

    # 1) Aligned f32 input (no pad / no slice pass): batch=2, channels=4,
    #    spatial 16 x 32 -> 4096 elements.
    x_f32 = jax.random.normal(k0, (2, 4, 16, 32), dtype=jnp.float32)
    y_f32 = jax.block_until_ready(basic_exp(x_f32))
    ref_f32 = np.exp(np.asarray(x_f32, dtype=np.float32))
    assert y_f32.shape == x_f32.shape and y_f32.dtype == x_f32.dtype
    np.testing.assert_allclose(np.asarray(y_f32), ref_f32, rtol=1e-5, atol=1e-6)

    # 2) Native bf16 I/O (halved HBM bytes; compute in f32 in-kernel).
    x_bf16 = x_f32.astype(jnp.bfloat16)
    y_bf16 = jax.block_until_ready(basic_exp(x_bf16))
    ref_bf16 = np.exp(np.asarray(x_bf16, dtype=np.float32))
    assert y_bf16.shape == x_bf16.shape and y_bf16.dtype == jnp.bfloat16
    np.testing.assert_allclose(np.asarray(y_bf16, dtype=np.float32), ref_bf16,
                               rtol=1e-2, atol=1e-2)

    # 3) Ragged shape (exercises the minimal-pad path + slice-back).
    x_rag = jax.random.normal(k1, (3, 5, 7), dtype=jnp.float32)
    y_rag = jax.block_until_ready(basic_exp(x_rag))
    ref_rag = np.exp(np.asarray(x_rag, dtype=np.float32))
    assert y_rag.shape == x_rag.shape
    np.testing.assert_allclose(np.asarray(y_rag), ref_rag, rtol=1e-5, atol=1e-6)

    print("KERNEL_OK")
</pallas_src>

<mosaic_0001>
module attributes {stable_mosaic.version = 11 : i64} {
  func.func @_exp_kernel(%arg0: i32, %arg1: memref<4x1024xf32, #tpu.memory_space<vmem>>, %arg2: memref<4x1024xf32, #tpu.memory_space<vmem>>) attributes {dimension_semantics = [#tpu.dimension_semantics<parallel>], iteration_bounds = array<i64: 1>, scalar_prefetch = 0 : i64, scratch_operands = 0 : i64, tpu.core_type = #tpu.core_type<tc>, window_params = [{transform_indices = @transform_0, window_bounds = array<i64: 4, 1024>}, {transform_indices = @transform_1, window_bounds = array<i64: 4, 1024>}]} {
    %c0 = arith.constant 0 : index
    %c0_0 = arith.constant 0 : index
    %0 = vector.load %arg1[%c0, %c0_0] : memref<4x1024xf32, #tpu.memory_space<vmem>>, vector<4x1024xf32>
    %1 = math.exp %0 : vector<4x1024xf32>
    %c0_1 = arith.constant 0 : index
    %c0_2 = arith.constant 0 : index
    %2 = vector.load %arg2[%c0_1, %c0_2] : memref<4x1024xf32, #tpu.memory_space<vmem>>, vector<4x1024xf32>
    tpu.vector_store %arg2[%c0_1, %c0_2], %1 {strides = array<i32>} : memref<4x1024xf32, #tpu.memory_space<vmem>>, vector<4x1024xf32>,
    return
  }
  func.func @transform_0(%arg0: i32) -> (i32, i32) {
    %c0_i32 = arith.constant 0 : i32
    %c0_i32_0 = arith.constant 0 : i32
    return %arg0, %c0_i32 : i32, i32
  }
  func.func @transform_1(%arg0: i32) -> (i32, i32) {
    %c0_i32 = arith.constant 0 : i32
    %c0_i32_0 = arith.constant 0 : i32
    return %arg0, %c0_i32 : i32, i32
  }
}

</mosaic_0001>

<bundles_post_ra>
// kernel: tpu_custom_call.1
= control target key start
LH: loop header
LB: loop body
LE: loop exit
PB: predicated region body
PF: predicated region fallthrough
CT: control target
= control target key end

     0   :  { %6 = vsyncpa [#allocation3], 0  ;;  %s146_s0 = inlined_call_operand.hbm [shape: f32[4,1024], index: 0, kind: input, shape index: {}]   ;;  %s147_s1 = inlined_call_operand.hbm [shape: f32[4,1024], index: 1, kind: output, shape index: {}]  }
   0x1   :  { %7 = vsyncpa [#allocation4], 0  ;;  %s110_s6 = smov [#allocation2]   ;;  %s62_s10 = scalar_lea.hbm %s146_s0, 512 }
   0x2   :  { %s14_s7 = sshll.u32 %s110_s6, 4  ;;  %p63_p0 = scmp.ne.s32.totalorder %s146_s0, %s62_s10  ;;  %s15_s7 = int_to_ptr.vmem [resolvable:$true] %s14_s7 }
   0x3   :  { %p66_p1 = scmp.lt.u32.totalorder %s62_s10, %s146_s0 }
   0x5   :  { %p68_p2 = pnand %p66_p1, %p63_p0 }
   0x7   :  { %71 = shalt.err (!%p68_p2)
}
   0x8   :  { %s72_s15 = scalar_lea.vmem %s15_s7, 512  ;;  %p77_p4 = scmp.lt.s32.totalorder %s15_s7, %s15_s7 }
   0x9   :  { %p73_p3 = scmp.ne.s32.totalorder %s15_s7, %s72_s15  ;;  %p78_p5 = scmp.lt.s32.totalorder %s72_s15, %s72_s15 }
   0xb   :  { %p79_p6 = por %p78_p5, %p77_p4 }
   0xd   :  { %p80_p7 = pnand %p79_p6, %p73_p3 }
   0xf   :  { %83 = shalt.err (!%p80_p7)
}
  0x10   :  { %17 = dma.hbm_to_vmem [thread:$0]  %s146_s0, 512, %s15_s7, [#allocation3]  }
  0x11   :  { %106 = dma.done.wait [#allocation3], 512  }
  0x12   :  { %107 = vsyncadd [#allocation3], 4294966784  ;;  %v21_v0 = vld [vmem:[#allocation2] sm:$0xff]  ;;  %v22_v1 = vld [vmem:[#allocation2 + $0x8] sm:$0xff]  ;;  %s111_s18 = smov [#allocation5]  }
  0x13   :  { %v23_v2 = vld [vmem:[#allocation2 + $0x10] sm:$0xff]  ;;  %v25_v3 = vmul.f32 1.442695, %v21_v0  ;;  %v27_v4 = vmul.f32 1.442695, %v22_v1  ;;  %v24_v6 = vld [vmem:[#allocation2 + $0x18] sm:$0xff] }
  0x14   :  { %v29_v5 = vmul.f32 1.442695, %v23_v2  ;;  %v31_v7 = vmul.f32 1.442695, %v24_v6  ;;  %s43_s19 = sshll.u32 %s111_s18, 4  ;;  %s44_s19 = int_to_ptr.vmem [resolvable:$true] %s43_s19 }
  0x15   :  { %54 = vpow2.f32 %v25_v3  ;;  %s84_s0 = scalar_lea.vmem %s44_s19, 512  ;;  %p89_p9 = scmp.lt.s32.totalorder %s44_s19, %s44_s19 }
  0x16   :  { %56 = vpow2.f32 %v27_v4  ;;  %p85_p8 = scmp.ne.s32.totalorder %s44_s19, %s84_s0  ;;  %p90_p10 = scmp.lt.s32.totalorder %s84_s0, %s84_s0 }
  0x17   :  { %58 = vpow2.f32 %v29_v5 }
  0x18   :  { %60 = vpow2.f32 %v31_v7  ;;  %p91_p11 = por %p90_p10, %p89_p9 }
  0x1a   :  { %p92_p12 = pnand %p91_p11, %p85_p8 }
  0x1f   :  { %v55_v8 = vpop.eup %54 }
  0x20   :  { %v57_v9 = vpop.eup %56  ;;  %33 = vst [vmem:[#allocation5] sm:$0xff] %v55_v8 }
  0x21   :  { %v59_v10 = vpop.eup %58  ;;  %34 = vst [vmem:[#allocation5 + $0x8] sm:$0xff] %v57_v9 }
  0x22   :  { %v61_v11 = vpop.eup %60  ;;  %35 = vst [vmem:[#allocation5 + $0x10] sm:$0xff] %v59_v10 }
  0x23   :  { %36 = vst [vmem:[#allocation5 + $0x18] sm:$0xff] %v61_v11 }
  0x24   :  { %95 = shalt.err (!%p92_p12)
}
  0x25   :  { %s96_s22 = scalar_lea.hbm %s147_s1, 512 }
  0x26   :  { %p97_p13 = scmp.ne.s32.totalorder %s147_s1, %s96_s22  ;;  %p100_p0 = scmp.lt.u32.totalorder %s96_s22, %s147_s1 }
  0x28   :  { %p102_p1 = pnand %p100_p0, %p97_p13 }
  0x2a   :  { %105 = shalt.err (!%p102_p1)
}
  0x2b   :  { %46 = dma.vmem_to_hbm [thread:$0]  %s44_s19, 512, %s147_s1, [#allocation4]  }
  0x2c   :  { %108 = dma.done.wait [#allocation4], 512  }
  0x2d   :  { %109 = vsyncadd [#allocation4], 4294966784 }
  0x2e   :  { %50 = vsyncpa [#allocation3], 1 }
  0x2f   :  { %51 = vsyncpa [#allocation4], 1 }

</bundles_post_ra>
